<compile_context>
chip_gen: v6e
topology: v6e:2x2x1
jax: 0.10.0
libtpu: 0.0.40
codegen_flags: <defaults>
</compile_context>

<pallas_src>
import jax
import jax.numpy as jnp
from jax import lax
from jax.experimental import pallas as pl
from jax.experimental.pallas import tpu as pltpu


_UNROLL_ROWS = 32  # unroll the per-row store loop up to this many rows


def _pos_emb_kernel_3d(w_ref, o_ref):
    # w_ref: (tile_s, d_model) slab of the positional table (VMEM)
    # o_ref: (tile_b, tile_s, d_model) output block (VMEM)
    tile_b = o_ref.shape[0]
    if tile_b <= _UNROLL_ROWS:
        for b in range(tile_b):
            o_ref[b] = w_ref[...]
    else:
        def body(b, carry):
            o_ref[b] = w_ref[...]
            return carry
        lax.fori_loop(0, tile_b, body, 0)


def _pos_emb_kernel_2d(w_ref, o_ref):
    # Lane-folded path for d_model < 128.
    # w_ref: (1, tile_s * d_model) slab of the flattened table (VMEM)
    # o_ref: (batch, tile_s * d_model) flattened output block (VMEM)
    n = o_ref.shape[0]
    if n <= _UNROLL_ROWS:
        for b in range(n):
            o_ref[pl.ds(b, 1), :] = w_ref[...]
    else:
        def body(b, carry):
            o_ref[pl.ds(b, 1), :] = w_ref[...]
            return carry
        lax.fori_loop(0, n, body, 0)


def positional_embedding(
    tokens: jax.Array,
    pos_weights: jax.Array,
    *,
    target_out_block_bytes: int = 8 * 1024 * 1024,
) -> jax.Array:
    """tokens: (batch, seq) int; pos_weights: (context_size, d_model) float.
    Returns (batch, seq, d_model) = pos_weights[:seq] broadcast over batch."""
    batch, seq = tokens.shape
    context_size, d_model = pos_weights.shape
    assert seq <= context_size

    dtype = pos_weights.dtype
    itemsize = jnp.dtype(dtype).itemsize
    row_bytes = d_model * itemsize
    seq_pad8 = pl.cdiv(seq, 8) * 8

    out_total_bytes = batch * seq * d_model * itemsize
    cost = pl.CostEstimate(
        flops=0,
        transcendentals=0,
        bytes_accessed=out_total_bytes + seq * d_model * itemsize,
    )

    # Lane-folded path: narrow embeddings (d_model < 128) would otherwise
    # lower to masked, narrow stores.  Fold (seq, d_model) -> (seq*d_model,)
    # so tile_s*d_model (tile_s a multiple of 8, d_model a multiple of 16) is
    # a multiple of 128.  Only used when the whole batch fits in one block.
    use_2d = (
        d_model < 128
        and d_model % 16 == 0
        and batch * 8 * row_bytes <= 2 * target_out_block_bytes
    )

    if use_2d:
        tile_s = min(
            seq_pad8,
            max(8, (target_out_block_bytes // (batch * row_bytes)) // 8 * 8),
        )
        if pl.cdiv(seq, tile_s) < 2 and seq >= 16:
            # Guarantee >= 2 blocks so v7x's two TensorCores both get work.
            tile_s = pl.cdiv(pl.cdiv(seq, 2), 8) * 8
        num_s = pl.cdiv(seq, tile_s)

        cover = num_s * tile_s
        table = pos_weights if cover <= context_size else pos_weights[:seq]
        table_flat = table.reshape(1, table.shape[0] * d_model)

        out_block_bytes = batch * tile_s * row_bytes
        in_block_bytes = tile_s * row_bytes
        vmem_limit = min(
            max(2 * out_block_bytes + 2 * in_block_bytes + (4 << 20), 16 << 20),
            48 << 20,
        )

        out2d = pl.pallas_call(
            _pos_emb_kernel_2d,
            out_shape=jax.ShapeDtypeStruct((batch, seq * d_model), dtype),
            grid_spec=pltpu.PrefetchScalarGridSpec(
                num_scalar_prefetch=0,
                grid=(num_s,),
                in_specs=[pl.BlockSpec((1, tile_s * d_model), lambda s: (0, s))],
                out_specs=pl.BlockSpec((batch, tile_s * d_model), lambda s: (0, s)),
            ),
            compiler_params=pltpu.CompilerParams(
                dimension_semantics=("parallel",),
                vmem_limit_bytes=vmem_limit,
            ),
            cost_estimate=cost,
        )(table_flat)
        return out2d.reshape(batch, seq, d_model)

    # General path: grid over (batch tiles, seq tiles).
    # Budget goes to tile_s first (large contiguous HBM writes per batch row),
    # then to tile_b; no silent 8x overshoot of the byte budget.
    tile_s = min(seq_pad8, max(8, (target_out_block_bytes // row_bytes) // 8 * 8))
    tile_b = max(1, min(batch, target_out_block_bytes // (tile_s * row_bytes)))
    num_s = pl.cdiv(seq, tile_s)
    num_b = pl.cdiv(batch, tile_b)
    if num_b * num_s < 2:
        # Guarantee >= 2 blocks (when possible) so v7x's two cores both work.
        if batch >= 2:
            tile_b = pl.cdiv(batch, 2)
            num_b = pl.cdiv(batch, tile_b)
        elif seq >= 16:
            tile_s = pl.cdiv(pl.cdiv(seq, 2), 8) * 8
            num_s = pl.cdiv(seq, tile_s)

    cover = num_s * tile_s
    table = pos_weights if cover <= context_size else pos_weights[:seq]

    out_block_bytes = tile_b * tile_s * row_bytes
    in_block_bytes = tile_s * row_bytes
    vmem_limit = min(
        max(2 * out_block_bytes + 2 * in_block_bytes + (4 << 20), 16 << 20),
        48 << 20,
    )

    return pl.pallas_call(
        _pos_emb_kernel_3d,
        out_shape=jax.ShapeDtypeStruct((batch, seq, d_model), dtype),
        grid_spec=pltpu.PrefetchScalarGridSpec(
            num_scalar_prefetch=0,
            grid=(num_b, num_s),
            in_specs=[pl.BlockSpec((tile_s, d_model), lambda b, s: (s, 0))],
            out_specs=pl.BlockSpec((tile_b, tile_s, d_model), lambda b, s: (b, s, 0)),
        ),
        compiler_params=pltpu.CompilerParams(
            dimension_semantics=("parallel", "parallel"),
            vmem_limit_bytes=vmem_limit,
        ),
        cost_estimate=cost,
    )(table)


if __name__ == "__main__":
    # Small configuration consistent with the module:
    batch = 2
    seq = 8
    context_size = 16
    d_model = 32
    init_range = 0.02

    key = jax.random.PRNGKey(0)
    k_w, k_tok = jax.random.split(key)

    # Deterministic parameter init: normal(0, init_range), like nn.init.normal_.
    pos_weights = (
        jax.random.normal(k_w, (context_size, d_model), dtype=jnp.float32) * init_range
    )
    # Tokens only matter for their shape in this module.
    tokens = jax.random.randint(k_tok, (batch, seq), 0, 100, dtype=jnp.int32)

    out = positional_embedding(tokens, pos_weights)
    out = jax.block_until_ready(out)

    # Reference check (plain JAX): weights[:seq] broadcast over batch.
    ref = jnp.broadcast_to(pos_weights[:seq][None], (batch, seq, d_model))
    assert out.shape == (batch, seq, d_model)
    assert out.dtype == jnp.float32
    assert jnp.allclose(out, ref)

    # Exercise the general 3-D path too (wide d_model, multi-tile grid).
    d2 = 256
    seq2 = 24
    batch2 = 4
    w2 = jax.random.normal(k_w, (32, d2), dtype=jnp.float32) * init_range
    t2 = jnp.zeros((batch2, seq2), dtype=jnp.int32)
    out2 = jax.block_until_ready(positional_embedding(t2, w2))
    ref2 = jnp.broadcast_to(w2[:seq2][None], (batch2, seq2, d2))
    assert jnp.allclose(out2, ref2)

    print("KERNEL_OK")
</pallas_src>

<mosaic_0001>
module attributes {stable_mosaic.version = 11 : i64} {
  func.func @_pos_emb_kernel_2d(%arg0: i32, %arg1: memref<1x256xf32, #tpu.memory_space<vmem>>, %arg2: memref<2x256xf32, #tpu.memory_space<vmem>>) attributes {dimension_semantics = [#tpu.dimension_semantics<parallel>], iteration_bounds = array<i64: 1>, scalar_prefetch = 0 : i64, scratch_operands = 0 : i64, tpu.core_type = #tpu.core_type<tc>, window_params = [{transform_indices = @transform_0, window_bounds = array<i64: 1, 256>}, {transform_indices = @transform_1, window_bounds = array<i64: 2, 256>}]} {
    %c0 = arith.constant 0 : index
    %c0_0 = arith.constant 0 : index
    %0 = vector.load %arg1[%c0, %c0_0] : memref<1x256xf32, #tpu.memory_space<vmem>>, vector<1x256xf32>
    %c0_1 = arith.constant 0 : index
    %c0_2 = arith.constant 0 : index
    %1 = vector.load %arg2[%c0_1, %c0_2] : memref<2x256xf32, #tpu.memory_space<vmem>>, vector<1x256xf32>
    tpu.vector_store %arg2[%c0_1, %c0_2], %0 {strides = array<i32>} : memref<2x256xf32, #tpu.memory_space<vmem>>, vector<1x256xf32>,
    %c0_3 = arith.constant 0 : index
    %c0_4 = arith.constant 0 : index
    %2 = vector.load %arg1[%c0_3, %c0_4] : memref<1x256xf32, #tpu.memory_space<vmem>>, vector<1x256xf32>
    %c1 = arith.constant 1 : index
    %c0_5 = arith.constant 0 : index
    %3 = vector.load %arg2[%c1, %c0_5] : memref<2x256xf32, #tpu.memory_space<vmem>>, vector<1x256xf32>
    tpu.vector_store %arg2[%c1, %c0_5], %2 {strides = array<i32>} : memref<2x256xf32, #tpu.memory_space<vmem>>, vector<1x256xf32>,
    return
  }
  func.func @transform_0(%arg0: i32) -> (i32, i32) {
    %c0_i32 = arith.constant 0 : i32
    %c0_i32_0 = arith.constant 0 : i32
    return %c0_i32, %arg0 : i32, i32
  }
  func.func @transform_1(%arg0: i32) -> (i32, i32) {
    %c0_i32 = arith.constant 0 : i32
    %c0_i32_0 = arith.constant 0 : i32
    return %c0_i32, %arg0 : i32, i32
  }
}

</mosaic_0001>

<bundles_post_ra>
// kernel: tpu_custom_call.1
= control target key start
LH: loop header
LB: loop body
LE: loop exit
PB: predicated region body
PF: predicated region fallthrough
CT: control target
= control target key end

     0   :  { %6 = vsyncpa [#allocation3], 0  ;;  %s109_s0 = inlined_call_operand.hbm [shape: f32[1,512], index: 0, kind: input, shape index: {}]   ;;  %s110_s1 = inlined_call_operand.hbm [shape: f32[2,256], index: 1, kind: output, shape index: {}]  }
   0x1   :  { %7 = vsyncpa [#allocation4], 0  ;;  %s91_s6 = smov [#allocation2]  }
   0x2   :  { %s14_s7 = sshll.u32 %s91_s6, 4  ;;  %s15_s7 = int_to_ptr.vmem [resolvable:$true] %s14_s7 }
   0x3   :  { %s55_s8 = scalar_lea.vmem %s15_s7, 32  ;;  %p60_p1 = scmp.lt.s32.totalorder %s15_s7, %s15_s7 }
   0x4   :  { %p56_p0 = scmp.ne.s32.totalorder %s15_s7, %s55_s8  ;;  %p61_p2 = scmp.lt.s32.totalorder %s55_s8, %s55_s8 }
   0x6   :  { %p62_p3 = por %p61_p2, %p60_p1 }
   0x8   :  { %p63_p4 = pnand %p62_p3, %p56_p0 }
   0xa   :  { %66 = shalt.err (!%p63_p4)
}
   0xb   :  { %17 = dma.hbm_to_vmem [thread:$0]  %s109_s0, 32, %s15_s7, [#allocation3]  }
   0xc   :  { %87 = dma.done.wait [#allocation3], 32  }
   0xd   :  { %88 = vsyncadd [#allocation3], 4294967264  ;;  %v22_v0 = vlaneseq  ;;  %s92_s11 = smov [#allocation5]   ;;  %v21_v1 = vld [vmem:[#allocation2] sm:$0x3] }
   0xe   :  { %s36_s12 = sshll.u32 %s92_s11, 4  ;;  %v27_v2 = vld [vmem:[#allocation2] sm:$0x3]  ;;  %s37_s12 = int_to_ptr.vmem [resolvable:$true] %s36_s12 }
   0xf   :  { %vm24_vm0 = vcmp.lt.s32.totalorder %v22_v0, 256  ;;  %s67_s13 = scalar_lea.vmem %s37_s12, 64  ;;  %p72_p6 = scmp.lt.s32.totalorder %s37_s12, %s37_s12 }
  0x10   :  { %26 = vst.msk [vmem:[#allocation5] ss:$2 sm:$0x3] %vm24_vm0, %v21_v1  ;;  %29 = vst.msk [vmem:[#allocation5 + $0x1] ss:$2 sm:$0x3] %vm24_vm0, %v27_v2  ;;  %p68_p5 = scmp.ne.s32.totalorder %s37_s12, %s67_s13  ;;  %p73_p7 = scmp.lt.s32.totalorder %s67_s13, %s67_s13 }
  0x12   :  { %p74_p8 = por %p73_p7, %p72_p6 }
  0x14   :  { %p75_p9 = pnand %p74_p8, %p68_p5 }
  0x16   :  { %78 = shalt.err (!%p75_p9)
}
  0x17   :  { %39 = dma.vmem_to_hbm [thread:$0]  %s37_s12, 64, %s110_s1, [#allocation4]  }
  0x18   :  { %89 = dma.done.wait [#allocation4], 64  }
  0x19   :  { %90 = vsyncadd [#allocation4], 4294967232 }
  0x1a   :  { %43 = vsyncpa [#allocation3], 1 }
  0x1b   :  { %44 = vsyncpa [#allocation4], 1 }

</bundles_post_ra>
